<compile_context>
chip_gen: v6e
topology: v6e:2x2x1
jax: 0.10.0
libtpu: 0.0.40
codegen_flags: <defaults>
</compile_context>

<pallas_src>
import jax
import jax.numpy as jnp
from jax.experimental import pallas as pl
from jax.experimental.pallas import tpu as pltpu


def _round_up(x, m):
    return (x + m - 1) // m * m


def _cdiv(a, b):
    return (a + b - 1) // b


def encoder_kernel(x_ref, w1_ref, b1_ref, g_ref, beta_ref, w2_ref, b2_ref, o_ref):
    # x_ref: (TR, C) bf16, w1_ref: (C, H) bf16, b1/g/beta: (1, H) f32,
    # w2_ref: (H, L) bf16, b2_ref: (1, L) f32, o_ref: (TR, L).
    # Hoist small-parameter reads once per tile (JAX does not CSE broadcasts).
    b1 = b1_ref[...]
    gamma = g_ref[...]
    beta = beta_ref[...]
    b2 = b2_ref[...]

    # Linear 1 on the MXU: bf16 operands, f32 accumulation.
    h = jnp.dot(x_ref[...], w1_ref[...], preferred_element_type=jnp.float32) + b1

    # LayerNorm over the hidden dim (eps=1e-5, PyTorch default).
    # One-pass statistics; gamma folded into the rsqrt scale (one fewer
    # full-tile VPU multiply); rsqrt goes to the EUP slot.
    mu = jnp.mean(h, axis=-1, keepdims=True)
    msq = jnp.mean(h * h, axis=-1, keepdims=True)
    var = msq - mu * mu
    scale = gamma * jax.lax.rsqrt(var + 1e-5)
    hn = (h - mu) * scale + beta

    # SiLU (sigmoid on the EUP; math stays in f32 -- v5e has no bf16 VPU/EUP).
    s = hn * jax.nn.sigmoid(hn)

    # Linear 2: bf16 operands, f32 accumulation. Output columns are exactly L
    # (no lane padding), so no wasted HBM writeback bytes.
    out = jnp.dot(s.astype(w2_ref.dtype), w2_ref[...],
                  preferred_element_type=jnp.float32) + b2
    o_ref[...] = out.astype(o_ref.dtype)


def _vmem_bytes(tile, C, H, L, in_itemsize, out_itemsize):
    # Conservative per-step VMEM estimate: double-buffered streamed blocks,
    # resident (but default double-buffered) weights, and live f32 tiles.
    x_buf = 2 * tile * C * in_itemsize
    o_buf = 2 * tile * L * out_itemsize
    w_buf = 2 * (C * H + H * L) * in_itemsize
    p_buf = 2 * 4 * _round_up(H, 128) * 4
    live = 4 * tile * H * 4
    return x_buf + o_buf + w_buf + p_buf + live


def encoder_forward(x, params, *, row_tile=512, compute_dtype=jnp.bfloat16):
    """x: [batch, window, in_channels] -> z: [batch, window, latent_dim]."""
    w1, b1, gamma, beta, w2, b2 = params
    B, T, C = x.shape
    H = w1.shape[1]
    L = w2.shape[1]
    N = B * T
    out_dtype = x.dtype

    # bf16 operands for the MXU (halves the streamed HBM bytes of x and the
    # weights). In a real model x/weights would already live in bf16; here the
    # cast is done once in the wrapper.
    x2 = x.reshape(N, C).astype(compute_dtype)
    w1c = w1.astype(compute_dtype)
    w2c = w2.astype(compute_dtype)
    b1_2 = b1.reshape(1, H).astype(jnp.float32)
    g_2 = gamma.reshape(1, H).astype(jnp.float32)
    be_2 = beta.reshape(1, H).astype(jnp.float32)
    b2_2 = b2.reshape(1, L).astype(jnp.float32)

    # Row tiling: big tile (multiple of 256) when N is large (HBM-streaming
    # bound regime); otherwise split rows into >=2 grid steps so both v7x
    # TensorCores get work. No wrapper-side padding: grid = cdiv(N, tile) and
    # Mosaic masks the boundary block's stores.
    align = 16  # bf16 sublane packing; also a multiple of the f32 8-row tile
    if N >= 2 * row_tile:
        tile = row_tile
    else:
        tile = min(_round_up(N, align), max(align, _round_up(_cdiv(N, 2), align)))
    in_isz = jnp.dtype(compute_dtype).itemsize
    out_isz = jnp.dtype(out_dtype).itemsize
    # Clamp so the working set fits comfortably even under v5e's 16 MiB scoped
    # default and v7x's 64 MiB physical VMEM.
    while tile > align and _vmem_bytes(tile, C, H, L, in_isz, out_isz) > 16 * 1024 * 1024:
        tile = max(align, _round_up(tile // 2, align))

    grid = (_cdiv(N, tile),)

    flops = 2 * N * (C * H + H * L) + 10 * N * H
    bytes_accessed = (
        x2.size * in_isz
        + (w1c.size + w2c.size) * in_isz
        + (b1_2.size + g_2.size + be_2.size + b2_2.size) * 4
        + N * L * out_isz
    )

    out = pl.pallas_call(
        encoder_kernel,
        out_shape=jax.ShapeDtypeStruct((N, L), out_dtype),
        grid_spec=pltpu.PrefetchScalarGridSpec(
            num_scalar_prefetch=0,
            grid=grid,
            in_specs=[
                pl.BlockSpec((tile, C), lambda i: (i, 0)),   # x rows (streamed)
                pl.BlockSpec((C, H), lambda i: (0, 0)),      # W1 (resident)
                pl.BlockSpec((1, H), lambda i: (0, 0)),      # b1
                pl.BlockSpec((1, H), lambda i: (0, 0)),      # LN gamma
                pl.BlockSpec((1, H), lambda i: (0, 0)),      # LN beta
                pl.BlockSpec((H, L), lambda i: (0, 0)),      # W2 (resident)
                pl.BlockSpec((1, L), lambda i: (0, 0)),      # b2
            ],
            out_specs=pl.BlockSpec((tile, L), lambda i: (i, 0)),
        ),
        compiler_params=pltpu.CompilerParams(
            dimension_semantics=("parallel",),
            vmem_limit_bytes=32 * 1024 * 1024),
        cost_estimate=pl.CostEstimate(
            flops=int(flops),
            transcendentals=int(N * H),
            bytes_accessed=int(bytes_accessed)),
    )(x2, w1c, b1_2, g_2, be_2, w2c, b2_2)

    return out.reshape(B, T, L)


def reference_forward(x, params, compute_dtype=None):
    """Plain-JAX reference matching the PyTorch module semantics.

    If compute_dtype is given, the matmul operands are rounded to that dtype
    first (mirrors the kernel's bf16 MXU operands) for a tight comparison.
    """
    w1, b1, gamma, beta, w2, b2 = params
    if compute_dtype is not None:
        cast = lambda a: a.astype(compute_dtype).astype(jnp.float32)
    else:
        cast = lambda a: a.astype(jnp.float32)
    h = cast(x) @ cast(w1) + b1
    mu = jnp.mean(h, axis=-1, keepdims=True)
    var = jnp.mean((h - mu) ** 2, axis=-1, keepdims=True)
    hn = (h - mu) / jnp.sqrt(var + 1e-5) * gamma + beta
    s = hn * jax.nn.sigmoid(hn)
    return cast(s) @ cast(w2) + b2


def init_params(key, in_channels, latent_dim):
    H = 2 * latent_dim
    k1, k2, k3, k4 = jax.random.split(key, 4)
    # Deterministic synthetic init (uniform, roughly PyTorch-Linear scale).
    lim1 = 1.0 / jnp.sqrt(in_channels)
    lim2 = 1.0 / jnp.sqrt(H)
    w1 = jax.random.uniform(k1, (in_channels, H), jnp.float32, -lim1, lim1)
    b1 = jax.random.uniform(k2, (H,), jnp.float32, -lim1, lim1)
    gamma = jnp.ones((H,), jnp.float32)   # nn.LayerNorm default init
    beta = jnp.zeros((H,), jnp.float32)
    w2 = jax.random.uniform(k3, (H, latent_dim), jnp.float32, -lim2, lim2)
    b2 = jax.random.uniform(k4, (latent_dim,), jnp.float32, -lim2, lim2)
    return (w1, b1, gamma, beta, w2, b2)


if __name__ == "__main__":
    # Small shapes consistent with the module's forward:
    #   in_channels=32, latent_dim=64 (hidden = 128), batch=2, window=50
    #   (the module's default window_size). N=100 also exercises the
    #   boundary-block (non-divisible grid) path.
    batch, window, in_channels, latent_dim = 2, 50, 32, 64

    key = jax.random.PRNGKey(0)
    kx, kp = jax.random.split(key)
    x = jax.random.normal(kx, (batch, window, in_channels), jnp.float32)
    params = init_params(kp, in_channels, latent_dim)

    z = jax.block_until_ready(encoder_forward(x, params))
    assert z.shape == (batch, window, latent_dim)
    assert bool(jnp.all(jnp.isfinite(z))), "non-finite output"

    # Tight check against a reference using the same bf16 operand rounding.
    z_ref_matched = reference_forward(x, params, compute_dtype=jnp.bfloat16)
    assert jnp.allclose(z, z_ref_matched, atol=5e-3, rtol=5e-3), \
        "mismatch vs matched-precision reference"

    # Loose check against the full-f32 module semantics (bf16 MXU operands
    # introduce ~1e-3-level differences).
    z_ref_f32 = reference_forward(x, params)
    assert jnp.allclose(z, z_ref_f32, atol=5e-2, rtol=5e-2), \
        "mismatch vs f32 reference"

    print("KERNEL_OK")
</pallas_src>

<mosaic_0001>
module attributes {stable_mosaic.version = 11 : i64} {
  func.func @encoder_kernel(%arg0: i32, %arg1: memref<64x32xbf16, #tpu.memory_space<vmem>>, %arg2: memref<32x128xbf16, #tpu.memory_space<vmem>>, %arg3: memref<1x128xf32, #tpu.memory_space<vmem>>, %arg4: memref<1x128xf32, #tpu.memory_space<vmem>>, %arg5: memref<1x128xf32, #tpu.memory_space<vmem>>, %arg6: memref<128x64xbf16, #tpu.memory_space<vmem>>, %arg7: memref<1x64xf32, #tpu.memory_space<vmem>>, %arg8: memref<64x64xf32, #tpu.memory_space<vmem>>) attributes {dimension_semantics = [#tpu.dimension_semantics<parallel>], iteration_bounds = array<i64: 2>, scalar_prefetch = 0 : i64, scratch_operands = 0 : i64, tpu.core_type = #tpu.core_type<tc>, window_params = [{transform_indices = @transform_0, window_bounds = array<i64: 64, 32>}, {pipeline_mode = #tpu.pipeline_mode<synchronous>, transform_indices = @transform_1, window_bounds = array<i64: 32, 128>}, {pipeline_mode = #tpu.pipeline_mode<synchronous>, transform_indices = @transform_2, window_bounds = array<i64: 1, 128>}, {pipeline_mode = #tpu.pipeline_mode<synchronous>, transform_indices = @transform_3, window_bounds = array<i64: 1, 128>}, {pipeline_mode = #tpu.pipeline_mode<synchronous>, transform_indices = @transform_4, window_bounds = array<i64: 1, 128>}, {pipeline_mode = #tpu.pipeline_mode<synchronous>, transform_indices = @transform_5, window_bounds = array<i64: 128, 64>}, {pipeline_mode = #tpu.pipeline_mode<synchronous>, transform_indices = @transform_6, window_bounds = array<i64: 1, 64>}, {transform_indices = @transform_7, window_bounds = array<i64: 64, 64>}]} {
    %c0 = arith.constant 0 : index
    %c0_0 = arith.constant 0 : index
    %0 = vector.load %arg3[%c0, %c0_0] : memref<1x128xf32, #tpu.memory_space<vmem>>, vector<1x128xf32>
    %c0_1 = arith.constant 0 : index
    %c0_2 = arith.constant 0 : index
    %1 = vector.load %arg4[%c0_1, %c0_2] : memref<1x128xf32, #tpu.memory_space<vmem>>, vector<1x128xf32>
    %c0_3 = arith.constant 0 : index
    %c0_4 = arith.constant 0 : index
    %2 = vector.load %arg5[%c0_3, %c0_4] : memref<1x128xf32, #tpu.memory_space<vmem>>, vector<1x128xf32>
    %c0_5 = arith.constant 0 : index
    %c0_6 = arith.constant 0 : index
    %3 = vector.load %arg7[%c0_5, %c0_6] : memref<1x64xf32, #tpu.memory_space<vmem>>, vector<1x64xf32>
    %c0_7 = arith.constant 0 : index
    %c0_8 = arith.constant 0 : index
    %4 = vector.load %arg1[%c0_7, %c0_8] : memref<64x32xbf16, #tpu.memory_space<vmem>>, vector<64x32xbf16>
    %c0_9 = arith.constant 0 : index
    %c0_10 = arith.constant 0 : index
    %5 = vector.load %arg2[%c0_9, %c0_10] : memref<32x128xbf16, #tpu.memory_space<vmem>>, vector<32x128xbf16>
    %cst = arith.constant dense<0.000000e+00> : vector<64x128xf32>
    %6 = tpu.matmul %4, %5, %cst {dimension_numbers = #tpu.dot_dimension_numbers<[1], [0], [0], [1], [0, 0, 1, 1], [], []>} : vector<64x32xbf16>, vector<32x128xbf16>, vector<64x128xf32> -> vector<64x128xf32>
    %7 = vector.broadcast %0 : vector<1x128xf32> to vector<64x128xf32>
    %8 = arith.addf %6, %7 : vector<64x128xf32>
    %cst_11 = arith.constant dense<0.000000e+00> : vector<64xf32>
    %9 = vector.multi_reduction <add>, %8, %cst_11 [1] : vector<64x128xf32> to vector<64xf32>
    %10 = vector.shape_cast %9 : vector<64xf32> to vector<64x1xf32>
    %cst_12 = arith.constant 1.280000e+02 : f32
    %11 = vector.broadcast %cst_12 : f32 to vector<64x1xf32>
    %12 = arith.divf %10, %11 : vector<64x1xf32>
    %13 = arith.mulf %8, %8 : vector<64x128xf32>
    %cst_13 = arith.constant dense<0.000000e+00> : vector<64xf32>
    %14 = vector.multi_reduction <add>, %13, %cst_13 [1] : vector<64x128xf32> to vector<64xf32>
    %15 = vector.shape_cast %14 : vector<64xf32> to vector<64x1xf32>
    %cst_14 = arith.constant 1.280000e+02 : f32
    %16 = vector.broadcast %cst_14 : f32 to vector<64x1xf32>
    %17 = arith.divf %15, %16 : vector<64x1xf32>
    %18 = arith.mulf %12, %12 : vector<64x1xf32>
    %19 = arith.subf %17, %18 : vector<64x1xf32>
    %cst_15 = arith.constant 9.99999974E-6 : f32
    %20 = vector.broadcast %cst_15 : f32 to vector<64x1xf32>
    %21 = arith.addf %19, %20 : vector<64x1xf32>
    %22 = math.rsqrt %21 : vector<64x1xf32>
    %23 = vector.broadcast %1 : vector<1x128xf32> to vector<64x128xf32>
    %24 = vector.broadcast %22 : vector<64x1xf32> to vector<64x128xf32>
    %25 = arith.mulf %23, %24 : vector<64x128xf32>
    %26 = vector.broadcast %12 : vector<64x1xf32> to vector<64x128xf32>
    %27 = arith.subf %8, %26 : vector<64x128xf32>
    %28 = arith.mulf %27, %25 : vector<64x128xf32>
    %29 = vector.broadcast %2 : vector<1x128xf32> to vector<64x128xf32>
    %30 = arith.addf %28, %29 : vector<64x128xf32>
    %31 = arith.negf %30 : vector<64x128xf32>
    %32 = math.exp %31 : vector<64x128xf32>
    %cst_16 = arith.constant 1.000000e+00 : f32
    %33 = vector.broadcast %cst_16 : f32 to vector<64x128xf32>
    %34 = arith.addf %33, %32 : vector<64x128xf32>
    %35 = arith.divf %33, %34 : vector<64x128xf32>
    %36 = arith.mulf %30, %35 : vector<64x128xf32>
    %37 = arith.truncf %36 : vector<64x128xf32> to vector<64x128xbf16>
    %c0_17 = arith.constant 0 : index
    %c0_18 = arith.constant 0 : index
    %38 = vector.load %arg6[%c0_17, %c0_18] : memref<128x64xbf16, #tpu.memory_space<vmem>>, vector<128x64xbf16>
    %cst_19 = arith.constant dense<0.000000e+00> : vector<64x64xf32>
    %39 = tpu.matmul %37, %38, %cst_19 {dimension_numbers = #tpu.dot_dimension_numbers<[1], [0], [0], [1], [0, 0, 1, 1], [], []>} : vector<64x128xbf16>, vector<128x64xbf16>, vector<64x64xf32> -> vector<64x64xf32>
    %40 = vector.broadcast %3 : vector<1x64xf32> to vector<64x64xf32>
    %41 = arith.addf %39, %40 : vector<64x64xf32>
    %c0_20 = arith.constant 0 : index
    %c0_21 = arith.constant 0 : index
    %42 = vector.load %arg8[%c0_20, %c0_21] : memref<64x64xf32, #tpu.memory_space<vmem>>, vector<64x64xf32>
    tpu.vector_store %arg8[%c0_20, %c0_21], %41 {strides = array<i32>} : memref<64x64xf32, #tpu.memory_space<vmem>>, vector<64x64xf32>,
    return
  }
  func.func @transform_0(%arg0: i32) -> (i32, i32) {
    %c0_i32 = arith.constant 0 : i32
    %c0_i32_0 = arith.constant 0 : i32
    return %arg0, %c0_i32 : i32, i32
  }
  func.func @transform_1(%arg0: i32) -> (i32, i32) {
    %c0_i32 = arith.constant 0 : i32
    %c0_i32_0 = arith.constant 0 : i32
    %c0_i32_1 = arith.constant 0 : i32
    return %c0_i32, %c0_i32_0 : i32, i32
  }
  func.func @transform_2(%arg0: i32) -> (i32, i32) {
    %c0_i32 = arith.constant 0 : i32
    %c0_i32_0 = arith.constant 0 : i32
    %c0_i32_1 = arith.constant 0 : i32
    return %c0_i32, %c0_i32_0 : i32, i32
  }
  func.func @transform_3(%arg0: i32) -> (i32, i32) {
    %c0_i32 = arith.constant 0 : i32
    %c0_i32_0 = arith.constant 0 : i32
    %c0_i32_1 = arith.constant 0 : i32
    return %c0_i32, %c0_i32_0 : i32, i32
  }
  func.func @transform_4(%arg0: i32) -> (i32, i32) {
    %c0_i32 = arith.constant 0 : i32
    %c0_i32_0 = arith.constant 0 : i32
    %c0_i32_1 = arith.constant 0 : i32
    return %c0_i32, %c0_i32_0 : i32, i32
  }
  func.func @transform_5(%arg0: i32) -> (i32, i32) {
    %c0_i32 = arith.constant 0 : i32
    %c0_i32_0 = arith.constant 0 : i32
    %c0_i32_1 = arith.constant 0 : i32
    return %c0_i32, %c0_i32_0 : i32, i32
  }
  func.func @transform_6(%arg0: i32) -> (i32, i32) {
    %c0_i32 = arith.constant 0 : i32
    %c0_i32_0 = arith.constant 0 : i32
    %c0_i32_1 = arith.constant 0 : i32
    return %c0_i32, %c0_i32_0 : i32, i32
  }
  func.func @transform_7(%arg0: i32) -> (i32, i32) {
    %c0_i32 = arith.constant 0 : i32
    %c0_i32_0 = arith.constant 0 : i32
    return %arg0, %c0_i32 : i32, i32
  }
}

</mosaic_0001>

<bundles_post_ra>
// kernel: tpu_custom_call.1
= control target key start
LH: loop header
LB: loop body
LE: loop exit
PB: predicated region body
PF: predicated region fallthrough
CT: control target
= control target key end

     0   :  { %s1403_s24 = smov 0   ;;  %s1405_s25 = smov 0   ;;  %s1677_s0 = inlined_call_operand.vmem [shape: bf16[100,32], index: 0, kind: input, shape index: {}]   ;;  %s1678_s1 = inlined_call_operand.vmem [shape: bf16[32,128], index: 1, kind: input, shape index: {}]   ;;  %s1679_s2 = inlined_call_operand.vmem [shape: f32[1,128], index: 2, kind: input, shape index: {}]   ;;  %s1680_s3 = inlined_call_operand.vmem [shape: f32[1,128], index: 3, kind: input, shape index: {}]   ;;  %s1681_s4 = inlined_call_operand.vmem [shape: f32[1,128], index: 4, kind: input, shape index: {}]   ;;  %s1682_s5 = inlined_call_operand.vmem [shape: bf16[128,64], index: 5, kind: input, shape index: {}]   ;;  %s1683_s6 = inlined_call_operand.vmem [shape: f32[1,64], index: 6, kind: input, shape index: {}]   ;;  %s1684_s7 = inlined_call_operand.vmem [shape: f32[100,64], index: 7, kind: output, shape index: {}]  }
   0x1   :  { %s1407_s26 = smov 0  }
   0x2 LB: > { %s1416_s27 = sadd.s32 4294967295, %s1329_s26   ;;  %s1418_s28 = sadd.s32 1, %s1329_s26   ;;  %s1329_s26 = sphi %s1407_s26, %s1691_s26   ;;  %s1325_s25 = sphi %s1405_s25, %s1690_s25   ;;  %s1321_s24 = sphi %s1403_s24, %s1689_s24  }
   0x3   : > { %s173_s29 = ssub.s32 %s1329_s26, %s1418_s28  ;;  %s176_s30 = sadd.s32 1, %s1325_s25 }
   0x4   : > { %p174_p0 = scmp.eq.s32.totalorder %s173_s29, 0  ;;  %p186_p1 = scmp.ne.s32.totalorder %s1325_s25, %s1321_s24 }
   0x5   : > { %p187_p2 = scmp.eq.s32.totalorder %s1416_s27, 1  ;;  %p1017_p3 = scmp.ge.s32.totalorder %s1329_s26, 1 }
   0x6   : > { %s1426_s8 = scalar_select %p174_p0, %s1325_s25, %s176_s30  }
   0x7   : > { %p1428_p4 = por %p187_p2, %p186_p1  ;;  %p246_p5 = scmp.lt.s32.totalorder %s1329_s26, 3 }
   0x9   : > { %p247_p6 = pnand %p1017_p3, %p246_p5 }
   0xa   : > { %s1436_s12 = sshll.u32 (!%p247_p6), %s1416_s27, 3  ;;  %s278_s30 = sand.u32 (!%p247_p6), 1, %s1321_s24  }
   0xb   : > { %250 = sbr.rel (%p247_p6) target bundleno = 691 (0x2b3), region = 48  ;;  %p286_p7 = scmp.lt.s32.totalorder (!%p247_p6), %s1436_s12, 12 }
   0xc   : > { %s1018_s10 = sshll.u32 (!%p247_p6), %s278_s30, 6 }
   0xd   : > { %s1598_s14 = scalar_lea.vmem (!%p247_p6), [#allocation2], %s1018_s10  }
  0x10   : > { %v1213_v0 = vld [vmem:[%s1678_s1 + $0x8] sm:$0xff]   ;;  %v1214_v1 = vld [vmem:[%s1678_s1] sm:$0xff]   ;;  %s287_s15 = scalar_select %p286_p7, %s1436_s12, 12  ;;  %vm355_vm0 = vcmask 261120   ;;  %v1219_v31 = vld [vmem:[%s1682_s5 + $0x38] sm:$0xff]   ;;  %vm761_vm1 = vcmask 523264  }
  0x11   : > { %1089 = vmatprep.subr.bf16.mxu0 %v1213_v0  ;;  %v1021_v6 = vld [vmem:[%s1679_s2] ss:$0 sm:$0xff]  ;;  %v1220_v32 = vld [vmem:[%s1682_s5 + $0x30] sm:$0xff]   ;;  %1101 = vmatprep.subr.bf16.mxu1 %v1219_v31  ;;  %v1221_v33 = vld [vmem:[%s1682_s5 + $0x28] sm:$0xff]   ;;  %s778_s24 = ssub.s32 (%p1428_p4), 13, %s1436_s12 }
  0x12   : > { %1090 = vmatpush3.bf16.msra.mxu0 %v1213_v0  ;;  %s1020_s16 = sshll.u32 %s287_s15, 2  ;;  %1102 = vmatpush3.bf16.msra.mxu1 %v1219_v31  ;;  %v1222_v34 = vld [vmem:[%s1682_s5 + $0x20] sm:$0xff]   ;;  %v1223_v35 = vld [vmem:[%s1682_s5 + $0x18] sm:$0xff]   ;;  %v1224_v36 = vld [vmem:[%s1682_s5 + $0x10] sm:$0xff]   ;;  %s1068_s15 = sshll.u32 (%p1428_p4), %s1416_s27, 6 }
  0x13   : > { %1091 = vmatprep.subr.bf16.mxu0 %v1214_v1  ;;  %s289_s19 = scalar_lea.vmem %s1677_s0, %s1020_s16  ;;  %1103 = vmatprep.subr.bf16.mxu1 %v1220_v32  ;;  %v1225_v37 = vld [vmem:[%s1682_s5 + $0x8] sm:$0xff]   ;;  %v1226_v38 = vld [vmem:[%s1682_s5] sm:$0xff]   ;;  %p779_p8 = scmp.lt.s32.totalorder (%p1428_p4), %s778_s24, 8 }
  0x14   : > { %v1215_v2 = vld [vmem:[%s289_s19] sm:$0xff]   ;;  %v1216_v3 = vld [vmem:[%s289_s19 + $0x8] sm:$0xff]   ;;  %v1217_v4 = vld [vmem:[%s289_s19 + $0x10] sm:$0xff]   ;;  %s1623_s18 = scalar_lea.vmem (%p1428_p4), %s1684_s7, %s1068_s15  }
  0x15   : > { %1093 = vmatprep.mubr.msk.bf16.mxu0 %vm355_vm0, %v1215_v2  ;;  %v1218_v5 = vld [vmem:[%s289_s19 + $0x18] sm:$0xff]  }
  0x16   : > { %1092 = vmatpush3.bf16.msra.mxu0 %v1214_v1  ;;  %1104 = vmatpush3.bf16.msra.mxu1 %v1220_v32 }
  0x17   : > { %1105 = vmatprep.subr.bf16.mxu1 %v1221_v33 }
  0x19   : > { %1094 = vmatmul.mubr.msk.bf16.vlgmr.msra.gmra.mxu0 %vm355_vm0, %v1216_v3 }
  0x1a   : > { %1097 = vmatprep.mubr.msk.bf16.mxu0 %vm355_vm0, %v1217_v4  ;;  %1106 = vmatpush3.bf16.msra.mxu1 %v1221_v33 }
  0x1b   : > { %1107 = vmatprep.subr.bf16.mxu1 %v1222_v34 }
  0x1e   : > { %1108 = vmatpush3.bf16.msra.mxu1 %v1222_v34 }
  0x1f   : > { %1109 = vmatprep.subr.bf16.mxu1 %v1223_v35 }
  0x21   : > { %1098 = vmatmul.mubr.msk.bf16.gmra.mxu0 %vm355_vm0, %v1218_v5 }
  0x22   : > { %1110 = vmatpush3.bf16.msra.mxu1 %v1223_v35 }
  0x23   : > { %1111 = vmatprep.subr.bf16.mxu1 %v1224_v36 }
  0x26   : > { %1112 = vmatpush3.bf16.msra.mxu1 %v1224_v36  ;;  %v1549_v36 = vld [vmem:[%s1681_s4] ss:$0 sm:$0xff] }
  0x27   : > { %1113 = vmatprep.subr.bf16.mxu1 %v1225_v37 }
  0x2a   : > { %1114 = vmatpush3.bf16.msra.mxu1 %v1225_v37 }
  0x2b   : > { %1115 = vmatprep.subr.bf16.mxu1 %v1226_v38 }
  0x2e   : > { %1116 = vmatpush3.bf16.msra.mxu1 %v1226_v38 }
  0xd9   : > { %v1095_v7 = vpop.f32.mrf.mxu0 }
  0xda   : > { %v1449_v8 = vadd.f32 %v1095_v7, %v1021_v6 }
  0xdb   : > { %v402_v9 = vpop.f32.mrf.mxu0 }
  0xdc   : > { %v1451_v10 = vadd.f32 %v1021_v6, %v402_v9  ;;  %437 = vadd.xlane.f32.xlu1 %v1449_v8  ;;  %v460_v14 = vmul.f32 %v1449_v8, %v1449_v8 }
  0xdd   : > { %v1096_v11 = vpop.f32.mrf.mxu0 }
  0xde   : > { %v1454_v12 = vadd.f32 %v1096_v11, %v1021_v6  ;;  %433 = vadd.xlane.f32.xlu0 %v1451_v10  ;;  %v458_v19 = vmul.f32 %v1451_v10, %v1451_v10  ;;  %v1532_v11 = vld [vmem:[%s1680_s3] ss:$0 sm:$0xff] }
  0xdf   : > { %v405_v13 = vpop.f32.mrf.mxu0 }
  0xe0   : > { %439 = vadd.xlane.f32.xlu1 %v1454_v12  ;;  %v1460_v16 = vadd.f32 %v1021_v6, %v405_v13  ;;  %v461_v17 = vmul.f32 %v1454_v12, %v1454_v12 }
  0xe1   : > { %v1099_v15 = vpop.f32.mrf.mxu0 }
  0xe2   : > { %470 = vadd.xlane.f32.xlu0 %v460_v14  ;;  %v459_v20 = vmul.f32 %v1460_v16, %v1460_v16  ;;  %v1471_v24 = vadd.f32 %v1099_v15, %v1021_v6 }
  0xe3   : > { %v418_v18 = vpop.f32.mrf.mxu0 }
  0xe4   : > { %472 = vadd.xlane.f32.xlu1 %v461_v17  ;;  %v1477_v26 = vadd.f32 %v1021_v6, %v418_v18  ;;  %v464_v30 = vmul.f32 %v1471_v24, %v1471_v24 }
  0xe5   : > { %v1100_v21 = vpop.f32.mrf.mxu0 }
  0xe6   : > { %466 = vadd.xlane.f32.xlu0 %v458_v19  ;;  %v1468_v22 = vadd.f32 %v1100_v21, %v1021_v6  ;;  %v462_v28 = vmul.f32 %v1477_v26, %v1477_v26 }
  0xe7   : > { %v421_v23 = vpop.f32.mrf.mxu0 }
  0xe8   : > { %468 = vadd.xlane.f32.xlu1 %v459_v20  ;;  %v1474_v25 = vadd.f32 %v1021_v6, %v421_v23  ;;  %v465_v29 = vmul.f32 %v1468_v22, %v1468_v22 }
  0xea   : > { %435 = vadd.xlane.f32.xlu0 %v1460_v16  ;;  %v463_v27 = vmul.f32 %v1474_v25, %v1474_v25 }
  0xec   : > { %447 = vadd.xlane.f32.xlu1 %v1468_v22 }
  0xee   : > { %445 = vadd.xlane.f32.xlu0 %v1471_v24 }
  0xf0   : > { %443 = vadd.xlane.f32.xlu1 %v1474_v25 }
  0xf2   : > { %441 = vadd.xlane.f32.xlu0 %v1477_v26 }
  0xf4   : > { %476 = vadd.xlane.f32.xlu1 %v463_v27 }
  0xf6   : > { %474 = vadd.xlane.f32.xlu0 %v462_v28 }
  0xf8   : > { %480 = vadd.xlane.f32.xlu1 %v465_v29 }
  0xfa   : > { %478 = vadd.xlane.f32.xlu0 %v464_v30 }
 0x165   : > { %v438_v39 = vpop.xlane.xlu1 %437 }
 0x166   : > { %v452_v41 = vmul.f32 0.0078125, %v438_v39 }
 0x167   : > { %v434_v40 = vpop.xlane.xlu0 %433 }
 0x168   : > { %v492_v45 = vmul.f32 %v452_v41, %v452_v41  ;;  %v1515_v46 = vmul.f32 0.0078125, %v434_v40  ;;  %v538_v30 = vsub.f32 %v1449_v8, %v452_v41 }
 0x169   : > { %v440_v42 = vpop.xlane.xlu1 %439 }
 0x16a   : > { %v1513_v43 = vmul.f32 0.0078125, %v440_v42  ;;  %v490_v53 = vmul.f32 %v1515_v46, %v1515_v46 }
 0x16b   : > { %v471_v44 = vpop.xlane.xlu0 %470 }
 0x16c   : > { %v484_v47 = vmul.f32 0.0078125, %v471_v44  ;;  %v493_v49 = vmul.f32 %v1513_v43, %v1513_v43  ;;  %v539_v39 = vsub.f32 %v1454_v12, %v1513_v43 }
 0x16d   : > { %v473_v48 = vpop.xlane.xlu1 %472 }
 0x16e   : > { %v500_v50 = vsub.f32 %v484_v47, %v492_v45  ;;  %v485_v51 = vmul.f32 0.0078125, %v473_v48  ;;  %v536_v47 = vsub.f32 %v1451_v10, %v1515_v46 }
 0x16f   : > { %v467_v52 = vpop.xlane.xlu0 %466 }
 0x170   : > { %v508_v54 = vadd.f32 1e-05, %v500_v50  ;;  %v501_v55 = vsub.f32 %v485_v51, %v493_v49  ;;  %v482_v56 = vmul.f32 0.0078125, %v467_v52 }
 0x171   : > { %v469_v57 = vpop.xlane.xlu1 %468 }
 0x172   : > { %1227 = vrsqrt.f32 %v508_v54  ;;  %v509_v58 = vadd.f32 1e-05, %v501_v55  ;;  %v498_v59 = vsub.f32 %v482_v56, %v490_v53  ;;  %v483_v0 = vmul.f32 0.0078125, %v469_v57 }
 0x173   : > { %v436_v60 = vpop.xlane.xlu0 %435 }
 0x174   : > { %1229 = vrsqrt.f32 %v509_v58  ;;  %v506_v61 = vadd.f32 1e-05, %v498_v59  ;;  %v1521_v62 = vmul.f32 0.0078125, %v436_v60 }
 0x175   : > { %v448_v63 = vpop.xlane.xlu1 %447 }
 0x176   : > { %1231 = vrsqrt.f32 %v506_v61  ;;  %v491_v1 = vmul.f32 %v1521_v62, %v1521_v62  ;;  %v1534_v13 = vmul.f32 0.0078125, %v448_v63  ;;  %v537_v57 = vsub.f32 %v1460_v16, %v1521_v62 }
 0x177   : > { %v446_v2 = vpop.xlane.xlu0 %445 }
 0x178   : > { %v499_v3 = vsub.f32 %v483_v0, %v491_v1  ;;  %v1538_v19 = vmul.f32 0.0078125, %v446_v2  ;;  %v497_v31 = vmul.f32 %v1534_v13, %v1534_v13 }
 0x179   : > { %v444_v4 = vpop.xlane.xlu1 %443 }
 0x17a   : > { %v507_v5 = vadd.f32 1e-05, %v499_v3  ;;  %v1525_v6 = vmul.f32 0.0078125, %v444_v4  ;;  %v496_v8 = vmul.f32 %v1538_v19, %v1538_v19 }
 0x17b   : > { %v442_v7 = vpop.xlane.xlu0 %441 }
 0x17c   : > { %1233 = vrsqrt.f32 %v507_v5  ;;  %v1527_v9 = vmul.f32 0.0078125, %v442_v7  ;;  %v495_v15 = vmul.f32 %v1525_v6, %v1525_v6  ;;  %v541_v0 = vsub.f32 %v1474_v25, %v1525_v6 }
 0x17d   : > { %v477_v14 = vpop.xlane.xlu1 %476  ;;  %v543_v5 = vsub.f32 %v1468_v22, %v1534_v13  ;;  %v542_v6 = vsub.f32 %v1471_v24, %v1538_v19 }
 0x17e   : > { %v487_v17 = vmul.f32 0.0078125, %v477_v14  ;;  %v494_v21 = vmul.f32 %v1527_v9, %v1527_v9  ;;  %v540_v16 = vsub.f32 %v1477_v26, %v1527_v9 }
 0x17f   : > { %v1228_v18 = vpop.eup %1227  ;;  %v475_v20 = vpop.xlane.xlu0 %474 }
 0x180   : > { %v503_v23 = vsub.f32 %v487_v17, %v495_v15  ;;  %v486_v27 = vmul.f32 0.0078125, %v475_v20  ;;  %v530_v28 = vmul.f32 %v1228_v18, %v1532_v11 }
 0x181   : > { %v1230_v29 = vpop.eup %1229  ;;  %v481_v32 = vpop.xlane.xlu1 %480 }
 0x182   : > { %v511_v33 = vadd.f32 1e-05, %v503_v23  ;;  %v502_v34 = vsub.f32 %v486_v27, %v494_v21  ;;  %v489_v35 = vmul.f32 0.0078125, %v481_v32  ;;  %v531_v37 = vmul.f32 %v1230_v29, %v1532_v11 }
 0x183   : > { %v1232_v38 = vpop.eup %1231  ;;  %v479_v40 = vpop.xlane.xlu0 %478  ;;  %v546_v41 = vmul.f32 %v538_v30, %v530_v28 }
 0x184   : > { %1235 = vrsqrt.f32 %v511_v33  ;;  %v510_v42 = vadd.f32 1e-05, %v502_v34  ;;  %v505_v44 = vsub.f32 %v489_v35, %v497_v31  ;;  %v488_v45 = vmul.f32 0.0078125, %v479_v40 }
 0x185   : > { %v528_v48 = vmul.f32 %v1232_v38, %v1532_v11  ;;  %v547_v49 = vmul.f32 %v539_v39, %v531_v37  ;;  %v1560_v50 = vadd.f32 %v1549_v36, %v546_v41 }
 0x186   : > { %1237 = vrsqrt.f32 %v510_v42  ;;  %v513_v12 = vadd.f32 1e-05, %v505_v44  ;;  %v504_v43 = vsub.f32 %v488_v45, %v496_v8 }
 0x187   : > { %v544_v51 = vmul.f32 %v536_v47, %v528_v48  ;;  %v1563_v52 = vadd.f32 %v1549_v36, %v547_v49  ;;  %v1036_v54 = vmul.f32 -1.442695, %v1560_v50 }
 0x188   : > { %1239 = vrsqrt.f32 %v513_v12  ;;  %v512_v53 = vadd.f32 1e-05, %v504_v43 }
 0x189   : > { %v1234_v55 = vpop.eup %1233  ;;  %v1567_v10 = vadd.f32 %v1549_v36, %v544_v51  ;;  %v1037_v46 = vmul.f32 -1.442695, %v1563_v52 }
 0x18a   : > { %v529_v56 = vmul.f32 %v1234_v55, %v1532_v11  ;;  %1241 = vrsqrt.f32 %v512_v53 }
 0x18b   : > { %v1034_v58 = vmul.f32 -1.442695, %v1567_v10  ;;  %1243 = vpow2.f32 %v1037_v46 }
 0x18c   : > { %v545_v59 = vmul.f32 %v537_v57, %v529_v56  ;;  %1245 = vpow2.f32 %v1036_v54 }
 0x18d   : > { %1247 = vpow2.f32 %v1034_v58 }
 0x18e   : > { %v559_v60 = vadd.f32 %v1549_v36, %v545_v59 }
 0x190   : > { %v1035_v61 = vmul.f32 -1.442695, %v559_v60 }
 0x191   : > { %v1236_v63 = vpop.eup %1235 }
 0x192   : > { %1249 = vpow2.f32 %v1035_v61  ;;  %v533_v1 = vmul.f32 %v1236_v63, %v1532_v11 }
 0x193   : > { %v1238_v2 = vpop.eup %1237 }
 0x194   : > { %v532_v62 = vmul.f32 %v1238_v2, %v1532_v11  ;;  %v549_v3 = vmul.f32 %v541_v0, %v533_v1 }
 0x195   : > { %v1240_v4 = vpop.eup %1239 }
 0x196   : > { %v548_v7 = vmul.f32 %v540_v16, %v532_v62  ;;  %v563_v14 = vadd.f32 %v1549_v36, %v549_v3  ;;  %v535_v15 = vmul.f32 %v1240_v4, %v1532_v11 }
 0x197   : > { %v1242_v25 = vpop.eup %1241 }
 0x198   : > { %v1244_v17 = vpop.eup %1243  ;;  %v562_v18 = vadd.f32 %v1549_v36, %v548_v7  ;;  %v1039_v26 = vmul.f32 -1.442695, %v563_v14  ;;  %v534_v9 = vmul.f32 %v1242_v25, %v1532_v11  ;;  %v551_v20 = vmul.f32 %v543_v5, %v535_v15 }
 0x199   : > { %v1246_v21 = vpop.eup %1245  ;;  %v593_v23 = vadd.f32 1.0, %v1244_v17 }
 0x19a   : > { %v1248_v27 = vpop.eup %1247  ;;  %v1038_v22 = vmul.f32 -1.442695, %v562_v18  ;;  %1251 = vpow2.f32 %v1039_v26  ;;  %v550_v13 = vmul.f32 %v542_v6, %v534_v9  ;;  %v565_v28 = vadd.f32 %v1549_v36, %v551_v20 }
 0x19b   : > { %v590_v29 = vadd.f32 1.0, %v1248_v27  ;;  %v592_v19 = vadd.f32 1.0, %v1246_v21 }
 0x19c   : > { %1253 = vpow2.f32 %v1038_v22  ;;  %v564_v30 = vadd.f32 %v1549_v36, %v550_v13  ;;  %v1041_v24 = vmul.f32 -1.442695, %v565_v28 }
 0x19d   : > { %1255 = vrcp.f32 %v593_v23 }
 0x19e   : > { %v1040_v31 = vmul.f32 -1.442695, %v564_v30  ;;  %1257 = vpow2.f32 %v1041_v24 }
 0x19f   : > { %v1250_v32 = vpop.eup %1249  ;;  %1259 = vrcp.f32 %v590_v29 }
 0x1a0   : > { %v591_v11 = vadd.f32 1.0, %v1250_v32  ;;  %1261 = vpow2.f32 %v1040_v31 }
 0x1a1   : > { %1263 = vrcp.f32 %v592_v19 }
 0x1a2   : > { %1265 = vrcp.f32 %v591_v11 }
 0x1a7   : > { %v1252_v33 = vpop.eup %1251 }
 0x1a8   : > { %v595_v34 = vadd.f32 1.0, %v1252_v33 }
 0x1a9   : > { %v1254_v35 = vpop.eup %1253 }
 0x1aa   : > { %v1256_v37 = vpop.eup %1255  ;;  %v594_v38 = vadd.f32 1.0, %v1254_v35  ;;  %1267 = vrcp.f32 %v595_v34 }
 0x1ab   : > { %v1258_v39 = vpop.eup %1257  ;;  %v617_v45 = vmul.f32 %v1256_v37, %v1563_v52 }
 0x1ac   : > { %v1260_v8 = vpop.eup %1259  ;;  %1269 = vrcp.f32 %v594_v38  ;;  %v597_v36 = vadd.f32 1.0, %v1258_v39 }
 0x1ad   : > { %v1262_v40 = vpop.eup %1261  ;;  %v614_v47 = vmul.f32 %v1260_v8, %v1567_v10 }
 0x1ae   : > { %v1264_v41 = vpop.eup %1263  ;;  %v596_v42 = vadd.f32 1.0, %v1262_v40  ;;  %1271 = vrcp.f32 %v597_v36 }
 0x1af   : > { %v1266_v44 = vpop.eup %1265  ;;  %v616_v49 = vmul.f32 %v1264_v41, %v1560_v50  ;;  %v1042_v50 = vld [vmem:[%s1683_s6] ss:$0 sm:$0xff] }
 0x1b0   : > { %v615_v48 = vmul.f32 %v1266_v44, %v559_v60  ;;  %1273 = vrcp.f32 %v596_v42 }
 0x1b1   : > { %v623_v43 = vpack.c.bf16 %v617_v45, %v616_v49 }
 0x1b2   : > { %v622_v12 = vpack.c.bf16 %v615_v48, %v614_v47 }
 0x1b4   : > { %1117 = vmatprep.mubr.bf16.mxu1 %v622_v12 }
 0x1b5   : > { %1118 = vmatmul.mubr.bf16.vlgmr.msra.gmra.mxu1 %v623_v43 }
 0x1b7   : > { %v1268_v51 = vpop.eup %1267 }
 0x1b8   : > { %v619_v55 = vmul.f32 %v1268_v51, %v563_v14 }
 0x1b9   : > { %v1270_v53 = vpop.eup %1269 }
 0x1ba   : > { %v618_v54 = vmul.f32 %v1270_v53, %v562_v18 }
 0x1bb   : > { %v1272_v46 = vpop.eup %1271 }
 0x1bc   : > { %v624_v56 = vpack.c.bf16 %v619_v55, %v618_v54  ;;  %v621_v58 = vmul.f32 %v1272_v46, %v565_v28 }
 0x1bd   : > { %v1274_v57 = vpop.eup %1273 }
 0x1be   : > { %1121 = vmatprep.mubr.bf16.mxu1 %v624_v56  ;;  %v620_v52 = vmul.f32 %v1274_v57, %v564_v30 }
 0x1c0   : > { %v625_v10 = vpack.c.bf16 %v621_v58, %v620_v52 }
 0x1c2   : > { %1122 = vmatmul.mubr.bf16.gmra.mxu1 %v625_v10 }
 0x275   : > { %v1119_v59 = vpop.f32.mrf.mxu1 }
 0x276   : > { %v739_v60 = vadd.f32 %v1119_v59, %v1042_v50 }
 0x277   : > { %v730_v61 = vpop.f32.mrf.mxu1 }
 0x278   : > { %764 = vst.msk [vmem:[%s1598_s14 + $0x10] sm:$0xff] %vm761_vm1, %v739_v60  ;;  %v731_v63 = vadd.f32 %v1042_v50, %v730_v61 }
 0x279   : > { %v1120_v0 = vpop.f32.mrf.mxu1 }
 0x27a   : > { %762 = vst.msk [vmem:[%s1598_s14] sm:$0xff] %vm761_vm1, %v731_v63  ;;  %v742_v1 = vadd.f32 %v1120_v0, %v1042_v50 }
 0x27b   : > { %v733_v2 = vpop.f32.mrf.mxu1 }
 0x27c   : > { %765 = vst.msk [vmem:[%s1598_s14 + $0x18] sm:$0xff] %vm761_vm1, %v742_v1  ;;  %v734_v16 = vadd.f32 %v1042_v50, %v733_v2 }
 0x27e   : > { %763 = vst.msk [vmem:[%s1598_s14 + $0x8] sm:$0xff] %vm761_vm1, %v734_v16 }
 0x282   : > { %v1123_v62 = vpop.f32.mrf.mxu1 }
 0x283   : > { %v755_v3 = vadd.f32 %v1123_v62, %v1042_v50 }
 0x284   : > { %v746_v4 = vpop.f32.mrf.mxu1 }
 0x285   : > { %768 = vst.msk [vmem:[%s1598_s14 + $0x30] sm:$0xff] %vm761_vm1, %v755_v3  ;;  %v747_v5 = vadd.f32 %v1042_v50, %v746_v4 }
 0x286   : > { %v1124_v7 = vpop.f32.mrf.mxu1 }
 0x287   : > { %766 = vst.msk [vmem:[%s1598_s14 + $0x20] sm:$0xff] %vm761_vm1, %v747_v5  ;;  %v758_v14 = vadd.f32 %v1124_v7, %v1042_v50  ;;  %776 = sbr.rel (!%p1428_p4) target bundleno = 691 (0x2b3), region = 52 }
 0x288   : > { %v749_v15 = vpop.f32.mrf.mxu1 }
 0x289   : > { %769 = vst.msk [vmem:[%s1598_s14 + $0x38] sm:$0xff] %vm761_vm1, %v758_v14  ;;  %v750_v25 = vadd.f32 %v1042_v50, %v749_v15 }
 0x28b   : > { %767 = vst.msk [vmem:[%s1598_s14 + $0x28] sm:$0xff] %vm761_vm1, %v750_v25 }
 0x28c   : > { %s1693_s24 = smov (!%p779_p8, %s778_s24), 8 }
 0x28d   : > { %s1053_s19 = sshll.u32 %s1693_s24, 7 }
 0x28e   : > { %p1056_p9 = scmp.eq.s32.totalorder %s1053_s19, 0 }
 0x28f   : > { %s1629_s20 = sshrl.u32 (!%p1056_p9), %s1693_s24, 3 }
 0x290   : > { %787 = sbr.rel (%p1056_p9) target bundleno = 691 (0x2b3), region = 56  ;;  %p1057_p10 = scmp.le.s32.totalorder (!%p1056_p9), %s1629_s20, 0 }
 0x295   : > { %970 = sbr.rel (%p1057_p10) target bundleno = 674 (0x2a2), region = 132  ;;  %s1686_s27 = smov (!%p1057_p10), %s1623_s18 }
 0x296   : > { %s1687_s9 = smov (!%p1057_p10), %s1598_s14  ;;  %s1638_s12 = smov (!%p1057_p10), 0  }
 0x297   : > { %s1640_s21 = smov (!%p1057_p10), 0  }
 0x29a LB: >> { %v864_v6 = vld [vmem:[%s1337_s9] sm:$0xff]  ;;  %v866_v17 = vld [vmem:[%s1337_s9 + $0x8] sm:$0xff]  ;;  %v868_v18 = vld [vmem:[%s1337_s9 + $0x10] sm:$0xff]  ;;  %s880_s22 = sadd.s32 1, %s1341_s12  ;;  %s858_s21 = sadd.s32 1, %s1345_s21   ;;  %s1345_s21 = sphi %s1640_s21, %s858_s21   ;;  %s1341_s12 = sphi %s1638_s12, %s1688_s12   ;;  %s1337_s9 = sphi %s1687_s9, %s885_s9   ;;  %s1333_s27 = sphi %s1686_s27, %s886_s27  }
 0x29b   : >> { %865 = vst [vmem:[%s1333_s27] sm:$0xff] %v864_v6  ;;  %867 = vst [vmem:[%s1333_s27 + $0x8] sm:$0xff] %v866_v17  ;;  %v870_v26 = vld [vmem:[%s1337_s9 + $0x18] sm:$0xff]  ;;  %v872_v9 = vld [vmem:[%s1337_s9 + $0x20] sm:$0xff]  ;;  %p881_p11 = scmp.ge.s32.totalorder %s880_s22, %s1629_s20  ;;  %p857_p12 = scmp.ge.s32.totalorder %s858_s21, %s1629_s20 }
 0x29c   : >> { %869 = vst [vmem:[%s1333_s27 + $0x10] sm:$0xff] %v868_v18  ;;  %v874_v20 = vld [vmem:[%s1337_s9 + $0x28] sm:$0xff]  ;;  %871 = vst [vmem:[%s1333_s27 + $0x18] sm:$0xff] %v870_v26  ;;  %v876_v21 = vld [vmem:[%s1337_s9 + $0x30] sm:$0xff] }
 0x29d   : >> { %873 = vst [vmem:[%s1333_s27 + $0x20] sm:$0xff] %v872_v9  ;;  %875 = vst [vmem:[%s1333_s27 + $0x28] sm:$0xff] %v874_v20  ;;  %v878_v23 = vld [vmem:[%s1337_s9 + $0x38] sm:$0xff]  ;;  %s1695_s22 = smov (%p881_p11, %s880_s22), 0  ;;  %860 = sbr.rel (!%p857_p12) target bundleno = 666 (0x29a), region = 138 }
 0x29e   : >> { %877 = vst [vmem:[%s1333_s27 + $0x30] sm:$0xff] %v876_v21  ;;  %879 = vst [vmem:[%s1333_s27 + $0x38] sm:$0xff] %v878_v23  ;;  %s1058_s23 = sshll.u32 %s1695_s22, 6  ;;  %s1688_s12 = smov %s1695_s22 }
 0x29f   : >> { %s885_s9 = scalar_lea.vmem %s1598_s14, %s1058_s23 [#allocation2]   ;;  %s886_s27 = scalar_lea.vmem %s1623_s18, %s1058_s23  }
 0x2a2 PF: > { %s1659_s26 = sand.u32 7, %s1693_s24   ;;  %s1069_s29 = sshll.u32 %s1629_s20, 6 }
 0x2a3   : > { %s891_s30 = scalar_lea.vmem %s1598_s14, %s1069_s29 [#allocation2]   ;;  %s893_s10 = scalar_lea.vmem %s1623_s18, %s1069_s29  }
 0x2a4   : > { %p1063_p13 = scmp.le.s32.totalorder %s1659_s26, 0 }
 0x2a5   : > { %s1347_s11 = smov (!%p1063_p13), %s893_s10   ;;  %s1351_s13 = smov (!%p1063_p13), %s891_s30  }
 0x2a6   : > { %984 = sbr.rel (%p1063_p13) target bundleno = 691 (0x2b3), region = 143  ;;  %s1355_s15 = smov (!%p1063_p13), 0  }
 0x2a7   : > { %s1359_s16 = smov (!%p1063_p13), 0  }
 0x2ab LB: >> { %v903_v27 = vld [vmem:[%s1353_s13] sm:$0xff]  ;;  %s905_s24 = sadd.s32 1, %s1357_s15  ;;  %s897_s16 = sadd.s32 1, %s1361_s16   ;;  %s1361_s16 = sphi %s1359_s16, %s897_s16   ;;  %s1357_s15 = sphi %s1355_s15, %s1356_s15   ;;  %s1353_s13 = sphi %s1351_s13, %s910_s13   ;;  %s1349_s11 = sphi %s1347_s11, %s911_s11  }
 0x2ac   : >> { %904 = vst [vmem:[%s1349_s11] sm:$0xff] %v903_v27  ;;  %p906_p0 = scmp.ge.s32.totalorder %s905_s24, %s1659_s26  ;;  %p896_p1 = scmp.ge.s32.totalorder %s897_s16, %s1659_s26 }
 0x2ae   : >> { %s1697_s24 = smov (%p906_p0, %s905_s24), 0  ;;  %899 = sbr.rel (!%p896_p1) target bundleno = 683 (0x2ab), region = 149 }
 0x2af   : >> { %s1064_s14 = sshll.u32 %s1697_s24, 3  ;;  %s1356_s15 = smov %s1697_s24  }
 0x2b0   : >> { %s910_s13 = scalar_lea.vmem %s891_s30, %s1064_s14 [#allocation2]   ;;  %s911_s11 = scalar_lea.vmem %s893_s10, %s1064_s14  }
 0x2b3 PF: > { %p14_p2 = scmp.ge.s32.totalorder %s1418_s28, 4   ;;  %s1689_s24 = smov %s1325_s25 }
 0x2b4   : > { %s1690_s25 = smov %s1426_s8  ;;  %s1691_s26 = smov %s1418_s28 }
 0x2b5   :  { %16 = sbr.rel (!%p14_p2) target bundleno = 2 (0x2), region = 160 }

</bundles_post_ra>
